<compile_context>
chip_gen: v7x
topology: tpu7x:2x2x1
jax: 0.10.0
libtpu: 0.0.40
codegen_flags: <defaults>
</compile_context>

<pallas_src>
from functools import partial

import jax
import jax.numpy as jnp
import numpy as np
from jax.experimental import pallas as pl
from jax.experimental.pallas import tpu as pltpu


def _multibox_kernel(y_true_ref, loc_pred_ref, cls_logit_ref, out_ref,
                     *, num_classes):
    # Blocks are (1, C, TN): boxes on the lane axis, features on sublanes.
    yt = y_true_ref[0]          # (4 + nc + 1, TN)
    loc_p = loc_pred_ref[0]     # (4, TN)
    logits = cls_logit_ref[0]   # (nc, TN)
    nc = num_classes

    # --- softmax cross-entropy via logsumexp (one exp pass, no log(probs)) --
    m = jnp.max(logits, axis=0, keepdims=True)            # (1, TN)
    e = jnp.exp(logits - m)                                # (nc, TN)
    s = jnp.sum(e, axis=0, keepdims=True)                  # (1, TN)
    lse = m + jnp.log(s)                                   # (1, TN)

    yt_cls = yt[4:4 + nc, :]                               # (nc, TN) one-hot
    tgt_logit = jnp.sum(yt_cls * logits, axis=0, keepdims=True)
    yt_sum = jnp.sum(yt_cls, axis=0, keepdims=True)        # 1 for real boxes, 0 for pad
    # == -sum(y_true * log(softmax(logits)))  (clamp at 1e-7 never binds here)
    conf = yt_sum * lse - tgt_logit                        # (1, TN)

    # --- negative-mining score: sum of non-background probs = 1 - p_bg ------
    p_bg = e[0:1, :] / s                                   # (1, TN)
    mask = yt[4 + nc:4 + nc + 1, :]                        # (1, TN) positive mask
    neg_score = (1.0 - p_bg) * (1.0 - mask)                # zeroed on positives

    # --- smooth L1 localization loss ----------------------------------------
    diff = yt[0:4, :] - loc_p                              # (4, TN)
    ad = jnp.abs(diff)
    l1 = jnp.where(ad < 1.0, 0.5 * diff * diff, ad - 0.5)
    loc = jnp.sum(l1, axis=0, keepdims=True)               # (1, TN)

    # single lane-dense store: rows = [conf, neg_score, loc]
    out_ref[0] = jnp.concatenate([conf, neg_score, loc], axis=0)  # (3, TN)


def multibox_loss(y_true, loc_pred, cls_logits, *, num_classes,
                  alpha=1.0, neg_pos_ratio=3.0, negatives_for_hard=100.0):
    B, N, C_true = y_true.shape
    nc = num_classes
    assert C_true == 4 + nc + 1

    # ---- choose a lane-aligned box tile and pad N up to a multiple of it ----
    TN = 512
    if N < TN:
        TN = ((N + 127) // 128) * 128
    N_pad = ((N + TN - 1) // TN) * TN
    pad = N_pad - N

    yt, lp, cl = y_true, loc_pred, cls_logits
    if pad:
        yt = jnp.pad(yt, ((0, 0), (0, pad), (0, 0)))
        lp = jnp.pad(lp, ((0, 0), (0, pad), (0, 0)))
        cl = jnp.pad(cl, ((0, 0), (0, pad), (0, 0)))

    # boxes-on-lanes layout (B, C, N_pad) — layout plumbing, done once in XLA.
    # (bf16 HBM storage of lp/cl would halve DMA bytes on v6e/v7x; kept f32
    #  here to match the f32 reference bit-for-bit within tolerance.)
    yt_t = jnp.transpose(yt, (0, 2, 1)).astype(jnp.float32)
    lp_t = jnp.transpose(lp, (0, 2, 1)).astype(jnp.float32)
    cl_t = jnp.transpose(cl, (0, 2, 1)).astype(jnp.float32)

    out = pl.pallas_call(
        partial(_multibox_kernel, num_classes=nc),
        out_shape=jax.ShapeDtypeStruct((B, 3, N_pad), jnp.float32),
        grid=(B, N_pad // TN),
        in_specs=[
            pl.BlockSpec((1, C_true, TN), lambda b, t: (b, 0, t)),
            pl.BlockSpec((1, 4, TN), lambda b, t: (b, 0, t)),
            pl.BlockSpec((1, nc, TN), lambda b, t: (b, 0, t)),
        ],
        out_specs=pl.BlockSpec((1, 3, TN), lambda b, t: (b, 0, t)),
        compiler_params=pltpu.CompilerParams(
            dimension_semantics=("parallel", "parallel")),
    )(yt_t, lp_t, cl_t)

    conf_loss = out[:, 0, :N]          # (B, N)
    neg_score = out[:, 1, :N]          # (B, N)
    loc_loss = out[:, 2, :N]           # (B, N)

    # tiny per-batch masked reductions: cheap in XLA, keeps kernel outputs
    # lane-dense and every grid axis "parallel".
    mask = y_true[:, :, -1].astype(jnp.float32)            # (B, N)
    pos_loc_loss = jnp.sum(loc_loss * mask, axis=1)        # (B,)
    pos_conf_loss = jnp.sum(conf_loss * mask, axis=1)      # (B,)
    num_pos = jnp.sum(mask, axis=1)                        # (B,)

    num_boxes = jnp.float32(N)
    num_neg = jnp.minimum(neg_pos_ratio * num_pos, num_boxes - num_pos)
    has_min = jnp.sum((num_neg > 0).astype(jnp.float32))
    num_neg_batch = jnp.where(has_min > 0, jnp.sum(num_neg),
                              jnp.float32(negatives_for_hard))

    # TODO(synk): dynamic-k torch.topk / torch.gather (hard negative mining)
    # has no static-shape Pallas equivalent; emulated with a stable
    # sort-with-payload (descending score) + rank<k mask in plain JAX.
    flat_score = neg_score.reshape(-1)
    flat_conf = conf_loss.reshape(-1)
    _, sorted_conf = jax.lax.sort((-flat_score, flat_conf), num_keys=1)
    k = jnp.floor(num_neg_batch)                    # matches int(...) truncation
    ranks = jnp.arange(flat_conf.shape[0], dtype=jnp.float32)
    neg_conf_loss_sum = jnp.sum(jnp.where(ranks < k, sorted_conf, 0.0))

    num_pos_c = jnp.where(num_pos != 0, num_pos, jnp.ones_like(num_pos))
    total = (jnp.sum(pos_conf_loss) + neg_conf_loss_sum
             + alpha * jnp.sum(pos_loc_loss))
    return total / jnp.sum(num_pos_c)


def _reference_loss(y_true, loc_pred, cls_logits, *, num_classes,
                    alpha=1.0, neg_pos_ratio=3.0, negatives_for_hard=100.0):
    """Pure-JAX mirror of the PyTorch forward (for sanity checking)."""
    B, N, _ = y_true.shape
    probs = jax.nn.softmax(cls_logits, axis=-1)
    y_pred = jnp.concatenate([loc_pred, probs], axis=-1)
    conf_pred = jnp.maximum(y_pred[:, :, 4:], 1e-7)
    conf_loss = -jnp.sum(y_true[:, :, 4:-1] * jnp.log(conf_pred), axis=-1)
    diff = y_true[:, :, :4] - y_pred[:, :, :4]
    ad = jnp.abs(diff)
    loc_loss = jnp.sum(jnp.where(ad < 1.0, 0.5 * diff * diff, ad - 0.5), axis=-1)
    mask = y_true[:, :, -1]
    pos_loc_loss = jnp.sum(loc_loss * mask, axis=1)
    pos_conf_loss = jnp.sum(conf_loss * mask, axis=1)
    num_pos = jnp.sum(mask, axis=-1)
    num_neg = jnp.minimum(neg_pos_ratio * num_pos, N - num_pos)
    has_min = jnp.sum((num_neg > 0).astype(jnp.float32))
    num_neg_batch = jnp.where(has_min > 0, jnp.sum(num_neg),
                              jnp.float32(negatives_for_hard))
    max_confs = jnp.sum(y_pred[:, :, 5:4 + num_classes], axis=2)
    max_confs = (max_confs * (1 - mask)).reshape(-1)
    order = jnp.argsort(-max_confs)
    sorted_conf = conf_loss.reshape(-1)[order]
    ranks = jnp.arange(B * N, dtype=jnp.float32)
    neg_sum = jnp.sum(jnp.where(ranks < jnp.floor(num_neg_batch), sorted_conf, 0.0))
    num_pos_c = jnp.where(num_pos != 0, num_pos, jnp.ones_like(num_pos))
    total = jnp.sum(pos_conf_loss) + neg_sum + alpha * jnp.sum(pos_loc_loss)
    return total / jnp.sum(num_pos_c)


if __name__ == "__main__":
    B, N, NC = 2, 256, 4          # batch, num_boxes, num_classes
    key = jax.random.PRNGKey(0)
    k1, k2, k3, k4, k5 = jax.random.split(key, 5)

    loc_true = jax.random.normal(k1, (B, N, 4), dtype=jnp.float32)
    cls_idx = jax.random.randint(k2, (B, N), 0, NC)
    cls_onehot = jax.nn.one_hot(cls_idx, NC, dtype=jnp.float32)
    pos_mask = (jax.random.uniform(k3, (B, N)) < 0.2).astype(jnp.float32)
    y_true = jnp.concatenate([loc_true, cls_onehot, pos_mask[..., None]], axis=-1)

    loc_pred = jax.random.normal(k4, (B, N, 4), dtype=jnp.float32)
    cls_logits = jax.random.normal(k5, (B, N, NC), dtype=jnp.float32)

    loss = multibox_loss(y_true, loc_pred, cls_logits, num_classes=NC)
    loss = jax.block_until_ready(loss)

    ref = jax.block_until_ready(
        _reference_loss(y_true, loc_pred, cls_logits, num_classes=NC))
    np.testing.assert_allclose(np.asarray(loss), np.asarray(ref),
                               rtol=1e-4, atol=1e-4)

    print("KERNEL_OK")
</pallas_src>

<mosaic_0001>
module attributes {stable_mosaic.version = 11 : i64} {
  func.func @_multibox_kernel(%arg0: i32, %arg1: i32, %arg2: memref<1x9x256xf32, #tpu.memory_space<vmem>>, %arg3: memref<1x4x256xf32, #tpu.memory_space<vmem>>, %arg4: memref<1x4x256xf32, #tpu.memory_space<vmem>>, %arg5: memref<1x3x256xf32, #tpu.memory_space<vmem>>) attributes {dimension_semantics = [#tpu.dimension_semantics<parallel>, #tpu.dimension_semantics<parallel>], iteration_bounds = array<i64: 2, 1>, scalar_prefetch = 0 : i64, scratch_operands = 0 : i64, tpu.core_type = #tpu.core_type<tc>, window_params = [{transform_indices = @transform_0, window_bounds = array<i64: 1, 9, 256>}, {transform_indices = @transform_1, window_bounds = array<i64: 1, 4, 256>}, {transform_indices = @transform_2, window_bounds = array<i64: 1, 4, 256>}, {transform_indices = @transform_3, window_bounds = array<i64: 1, 3, 256>}]} {
    %c0 = arith.constant 0 : index
    %c0_0 = arith.constant 0 : index
    %c0_1 = arith.constant 0 : index
    %0 = vector.load %arg2[%c0, %c0_0, %c0_1] : memref<1x9x256xf32, #tpu.memory_space<vmem>>, vector<1x9x256xf32>
    %1 = vector.shape_cast %0 : vector<1x9x256xf32> to vector<9x256xf32>
    %c0_2 = arith.constant 0 : index
    %c0_3 = arith.constant 0 : index
    %c0_4 = arith.constant 0 : index
    %2 = vector.load %arg3[%c0_2, %c0_3, %c0_4] : memref<1x4x256xf32, #tpu.memory_space<vmem>>, vector<1x4x256xf32>
    %3 = vector.shape_cast %2 : vector<1x4x256xf32> to vector<4x256xf32>
    %c0_5 = arith.constant 0 : index
    %c0_6 = arith.constant 0 : index
    %c0_7 = arith.constant 0 : index
    %4 = vector.load %arg4[%c0_5, %c0_6, %c0_7] : memref<1x4x256xf32, #tpu.memory_space<vmem>>, vector<1x4x256xf32>
    %5 = vector.shape_cast %4 : vector<1x4x256xf32> to vector<4x256xf32>
    %cst = arith.constant dense<0xFF800000> : vector<256xf32>
    %6 = vector.multi_reduction <maximumf>, %5, %cst [0] : vector<4x256xf32> to vector<256xf32>
    %7 = vector.shape_cast %6 : vector<256xf32> to vector<1x256xf32>
    %8 = vector.broadcast %7 : vector<1x256xf32> to vector<4x256xf32>
    %9 = arith.subf %5, %8 : vector<4x256xf32>
    %10 = math.exp %9 : vector<4x256xf32>
    %cst_8 = arith.constant dense<0.000000e+00> : vector<256xf32>
    %11 = vector.multi_reduction <add>, %10, %cst_8 [0] : vector<4x256xf32> to vector<256xf32>
    %12 = vector.shape_cast %11 : vector<256xf32> to vector<1x256xf32>
    %13 = math.log %12 : vector<1x256xf32>
    %14 = arith.addf %7, %13 : vector<1x256xf32>
    %15 = vector.extract_strided_slice %1 {offsets = [4, 0], sizes = [4, 256], strides = [1, 1]} : vector<9x256xf32> to vector<4x256xf32>
    %16 = arith.mulf %15, %5 : vector<4x256xf32>
    %cst_9 = arith.constant dense<0.000000e+00> : vector<256xf32>
    %17 = vector.multi_reduction <add>, %16, %cst_9 [0] : vector<4x256xf32> to vector<256xf32>
    %18 = vector.shape_cast %17 : vector<256xf32> to vector<1x256xf32>
    %cst_10 = arith.constant dense<0.000000e+00> : vector<256xf32>
    %19 = vector.multi_reduction <add>, %15, %cst_10 [0] : vector<4x256xf32> to vector<256xf32>
    %20 = vector.shape_cast %19 : vector<256xf32> to vector<1x256xf32>
    %21 = arith.mulf %20, %14 : vector<1x256xf32>
    %22 = arith.subf %21, %18 : vector<1x256xf32>
    %23 = vector.extract_strided_slice %10 {offsets = [0, 0], sizes = [1, 256], strides = [1, 1]} : vector<4x256xf32> to vector<1x256xf32>
    %24 = arith.divf %23, %12 : vector<1x256xf32>
    %25 = vector.extract_strided_slice %1 {offsets = [8, 0], sizes = [1, 256], strides = [1, 1]} : vector<9x256xf32> to vector<1x256xf32>
    %cst_11 = arith.constant 1.000000e+00 : f32
    %26 = vector.broadcast %cst_11 : f32 to vector<1x256xf32>
    %27 = arith.subf %26, %24 : vector<1x256xf32>
    %cst_12 = arith.constant 1.000000e+00 : f32
    %28 = vector.broadcast %cst_12 : f32 to vector<1x256xf32>
    %29 = arith.subf %28, %25 : vector<1x256xf32>
    %30 = arith.mulf %27, %29 : vector<1x256xf32>
    %31 = vector.extract_strided_slice %1 {offsets = [0, 0], sizes = [4, 256], strides = [1, 1]} : vector<9x256xf32> to vector<4x256xf32>
    %32 = arith.subf %31, %3 : vector<4x256xf32>
    %33 = math.absf %32 : vector<4x256xf32>
    %cst_13 = arith.constant 1.000000e+00 : f32
    %34 = vector.broadcast %cst_13 : f32 to vector<4x256xf32>
    %35 = arith.cmpf olt, %33, %34 : vector<4x256xf32>
    %cst_14 = arith.constant 5.000000e-01 : f32
    %36 = vector.broadcast %cst_14 : f32 to vector<4x256xf32>
    %37 = arith.mulf %36, %32 : vector<4x256xf32>
    %38 = arith.mulf %37, %32 : vector<4x256xf32>
    %cst_15 = arith.constant 5.000000e-01 : f32
    %39 = vector.broadcast %cst_15 : f32 to vector<4x256xf32>
    %40 = arith.subf %33, %39 : vector<4x256xf32>
    %41 = arith.select %35, %38, %40 : vector<4x256xi1>, vector<4x256xf32>
    %cst_16 = arith.constant dense<0.000000e+00> : vector<256xf32>
    %42 = vector.multi_reduction <add>, %41, %cst_16 [0] : vector<4x256xf32> to vector<256xf32>
    %43 = vector.shape_cast %42 : vector<256xf32> to vector<1x256xf32>
    %44 = tpu.concatenate %22, %30, %43 in 0 : vector<1x256xf32>, vector<1x256xf32>, vector<1x256xf32> -> vector<3x256xf32>
    %c0_17 = arith.constant 0 : index
    %c0_18 = arith.constant 0 : index
    %c0_19 = arith.constant 0 : index
    %45 = vector.load %arg5[%c0_17, %c0_18, %c0_19] : memref<1x3x256xf32, #tpu.memory_space<vmem>>, vector<1x3x256xf32>
    %46 = vector.shape_cast %45 : vector<1x3x256xf32> to vector<3x256xf32>
    %47 = vector.shape_cast %44 : vector<3x256xf32> to vector<1x3x256xf32>
    tpu.vector_store %arg5[%c0_17, %c0_18, %c0_19], %47 {strides = array<i32>} : memref<1x3x256xf32, #tpu.memory_space<vmem>>, vector<1x3x256xf32>,
    return
  }
  func.func @transform_0(%arg0: i32, %arg1: i32) -> (i32, i32, i32) {
    %c0_i32 = arith.constant 0 : i32
    %c0_i32_0 = arith.constant 0 : i32
    return %arg0, %c0_i32, %arg1 : i32, i32, i32
  }
  func.func @transform_1(%arg0: i32, %arg1: i32) -> (i32, i32, i32) {
    %c0_i32 = arith.constant 0 : i32
    %c0_i32_0 = arith.constant 0 : i32
    return %arg0, %c0_i32, %arg1 : i32, i32, i32
  }
  func.func @transform_2(%arg0: i32, %arg1: i32) -> (i32, i32, i32) {
    %c0_i32 = arith.constant 0 : i32
    %c0_i32_0 = arith.constant 0 : i32
    return %arg0, %c0_i32, %arg1 : i32, i32, i32
  }
  func.func @transform_3(%arg0: i32, %arg1: i32) -> (i32, i32, i32) {
    %c0_i32 = arith.constant 0 : i32
    %c0_i32_0 = arith.constant 0 : i32
    return %arg0, %c0_i32, %arg1 : i32, i32, i32
  }
}

</mosaic_0001>

<bundles_post_ra>
// kernel: tpu_custom_call.1
= control target key start
LH: loop header
LB: loop body
LE: loop exit
PB: predicated region body
PF: predicated region fallthrough
CT: control target
= control target key end

     0   :  { %s674_s12 = smov 0   ;;  %s676_s13 = smov 0   ;;  %s760_s0 = inlined_call_operand.vmem [shape: f32[2,9,256], index: 0, kind: input, shape index: {}]   ;;  %s761_s1 = inlined_call_operand.vmem [shape: f32[2,4,256], index: 1, kind: input, shape index: {}]   ;;  %s762_s2 = inlined_call_operand.vmem [shape: f32[2,4,256], index: 2, kind: input, shape index: {}]   ;;  %s763_s3 = inlined_call_operand.vmem [shape: f32[2,3,256], index: 3, kind: output, shape index: {}]  }
   0x1   :  { %s678_s14 = smov 0  }
   0x2 LB: > { %s25_s15 = sadd.s32 1, %s648_s13  ;;  %p578_p0 = scmp.ge.s32.totalorder %s652_s14, 1  ;;  %s652_s14 = sphi %s678_s14, %s13_s14   ;;  %s648_s13 = sphi %s676_s13, %s769_s13   ;;  %s644_s12 = sphi %s674_s12, %s768_s12  }
   0x3   : > { %p27_p1 = scmp.ge.s32.totalorder %s25_s15, 2  ;;  %p192_p2 = scmp.lt.s32.totalorder %s652_s14, 3 }
   0x5   : > { %s771_s15 = smov (%p27_p1, %s25_s15), 0  ;;  %p193_p3 = pnand %p578_p0, %p192_p2 }
   0x6   : > { %p243_p4 = scmp.lt.s32.totalorder (!%p193_p3), %s644_s12, 1  ;;  %vm291_vm0 = vcmask (!%p193_p3), 1043456   ;;  %vm440_vm3 = vcmask (!%p193_p3), 1040384   ;;  %vm443_vm4 = vcmask (!%p193_p3), 1041408  }
   0x7   : > { %196 = sbr.rel (%p193_p3) target bundleno = 91 (0x5b), region = 32 }
   0xe   : > { %s773_s12 = smov (!%p243_p4, %s644_s12), 1 }
   0xf   : > { %s692_s16 = sshll.u32 %s773_s12, 3  ;;  %s591_s20 = sshll.u32 %s773_s12, 5 }
  0x10   : > { %s270_s19 = scalar_lea.vmem %s762_s2, %s692_s16  ;;  %s260_s23 = scalar_lea.vmem %s761_s1, %s692_s16 }
  0x11   : > { %v287_v0 = vld [vmem:[%s270_s19] sm:$0xff]  ;;  %s713_s26 = scalar_lea.vmem %s760_s0, %s591_s20  ;;  %s280_s29 = scalar_lea.vmem %s763_s3, %s692_s16 }
  0x12   : > { %v289_v1 = vcombine.high %v287_v0, %v287_v0  ;;  %v292_v2 = vsel %vm291_vm0, %v287_v0, -inf  ;;  %v286_v19 = vld [vmem:[%s260_s23] sm:$0xff]  ;;  %v283_v21 = vld [vmem:[%s713_s26 + $0x8] sm:$0xff]  ;;  %v336_v23 = vcombine.low %v287_v0, %v287_v0 }
  0x13   : > { %v293_v3 = vrot.slane %v292_v2, 4  ;;  %v282_v20 = vld [vmem:[%s713_s26] sm:$0xff]  ;;  %v399_v22 = vcombine.high %v286_v19, %v286_v19  ;;  %v339_v24 = vmul.f32 %v287_v0, %v283_v21  ;;  %v363_v29 = vrot.slane %v283_v21, 4 }
  0x14   : > { %v299_v4 = vsel %vm291_vm0, %v289_v1, -inf  ;;  %v401_v25 = vsub.f32 %v282_v20, %v286_v19  ;;  %v338_v27 = vmul.f32 %v336_v23, %v282_v20  ;;  %v362_v28 = vrot.slane %v282_v20, 4 }
  0x15   : > { %v294_v5 = vmax.f32 %v292_v2, %v293_v3  ;;  %v300_v6 = vrot.slane %v299_v4, 4  ;;  %v402_v26 = vsub.f32 %v283_v21, %v399_v22  ;;  %v343_v30 = vrot.slane %v339_v24, 4  ;;  %v284_v24 = vld [vmem:[%s713_s26 + $0x10] sm:$0x1] }
  0x16   : > { %v403_v31 = vand.u32 2147483647, %v401_v25  ;;  %v407_v32 = vmul.f32 0.5, %v401_v25  ;;  %v342_v39 = vrot.slane %v338_v27, 4  ;;  %v366_v40 = vsel %vm291_vm0, %v362_v28, 0.0 }
  0x17   : > { %v295_v7 = vrot.slane %v294_v5, 2  ;;  %v301_v8 = vmax.f32 %v299_v4, %v300_v6  ;;  %v404_v34 = vand.u32 2147483647, %v402_v26  ;;  %v408_v35 = vmul.f32 0.5, %v402_v26 }
  0x18   : > { %v373_v41 = vsel %vm291_vm0, %v363_v29, 0.0  ;;  %v353_v43 = vsel %vm291_vm0, %v343_v30, 0.0  ;;  %v409_v44 = vmul.f32 %v407_v32, %v401_v25  ;;  %v587_v45 = vadd.f32 -0.5, %v403_v31  ;;  %v285_v25 = vld [vmem:[%s713_s26 + $0x18] sm:$0x1] }
  0x19   : > { %v296_v9 = vmax.f32 %v294_v5, %v295_v7  ;;  %v302_v10 = vrot.slane %v301_v8, 2  ;;  %v410_v48 = vmul.f32 %v408_v35, %v402_v26  ;;  %v588_v49 = vadd.f32 -0.5, %v404_v34 }
  0x1a   : > { %v367_v50 = vrot.slane %v366_v40, 4  ;;  %vm727_vm1 = vcmp.lt.f32.partialorder %v403_v31, 1.0  ;;  %vm731_vm2 = vcmp.lt.f32.partialorder %v404_v34, 1.0  ;;  %v346_v55 = vsel %vm291_vm0, %v342_v39, 0.0 }
  0x1b   : > { %v297_v11 = vrot.slane %v296_v9, 1  ;;  %v303_v12 = vmax.f32 %v301_v8, %v302_v10  ;;  %v354_v56 = vrot.slane %v353_v43, 4  ;;  %v374_v57 = vrot.slane %v373_v41, 4 }
  0x1c   : > { %v413_v60 = vsel %vm727_vm1, %v409_v44, %v587_v45  ;;  %v414_v61 = vsel %vm731_vm2, %v410_v48, %v588_v49  ;;  %v347_v62 = vrot.slane %v346_v55, 4  ;;  %v368_v63 = vadd.f32 %v367_v50, %v366_v40 }
  0x1d   : > { %v700_v13 = vmax.f32 %v296_v9, %v297_v11  ;;  %v304_v14 = vrot.slane %v303_v12, 1  ;;  %v375_v2 = vadd.f32 %v374_v57, %v373_v41  ;;  %v415_v3 = vsel %vm291_vm0, %v413_v60, 0.0 }
  0x1e   : > { %v422_v4 = vsel %vm291_vm0, %v414_v61, 0.0  ;;  %v355_v7 = vadd.f32 %v354_v56, %v353_v43  ;;  %v348_v8 = vadd.f32 %v347_v62, %v346_v55  ;;  %v369_v9 = vrot.slane %v368_v63, 2 }
  0x1f   : > { %v702_v15 = vmax.f32 %v303_v12, %v304_v14  ;;  %v416_v11 = vrot.slane %v415_v3, 4  ;;  %v423_v12 = vrot.slane %v422_v4, 4  ;;  %v376_v14 = vrot.slane %v375_v2, 2 }
  0x20   : > { %v370_v19 = vadd.f32 %v369_v9, %v368_v63  ;;  %v430_v31 = vlaneseq  ;;  %v391_v35 = vsub.f32 1.0, %v284_v24 }
  0x21   : > { %v308_v16 = vcombine.low %v700_v13, %v702_v15  ;;  %v417_v20 = vadd.f32 %v416_v11, %v415_v3  ;;  %v424_v21 = vadd.f32 %v423_v12, %v422_v4  ;;  %v377_v22 = vadd.f32 %v376_v14, %v375_v2 }
  0x22   : > { %v371_v27 = vrot.slane %v370_v19, 1 }
  0x23   : > { %v310_v17 = vsub.f32 %v287_v0, %v308_v16  ;;  %v356_v16 = vrot.slane %v355_v7, 2  ;;  %v418_v28 = vrot.slane %v417_v20, 2  ;;  %v425_v29 = vrot.slane %v424_v21, 2 }
  0x24   : > { %v378_v30 = vrot.slane %v377_v22, 1  ;;  %v372_v39 = vadd.f32 %v371_v27, %v370_v19 }
  0x25   : > { %v311_v18 = vmul.f32 1.442695, %v310_v17  ;;  %v357_v23 = vadd.f32 %v356_v16, %v355_v7  ;;  %v419_v41 = vadd.f32 %v418_v28, %v417_v20 }
  0x26   : > { %v379_v45 = vadd.f32 %v378_v30, %v377_v22 }
  0x27   : > { %622 = vpow2.f32 %v311_v18  ;;  %v349_v18 = vrot.slane %v348_v8, 2  ;;  %v358_v34 = vrot.slane %v357_v23, 1 }
  0x29   : > { %v350_v26 = vadd.f32 %v349_v18, %v348_v8  ;;  %v359_v48 = vadd.f32 %v358_v34, %v357_v23 }
  0x31   : > { %v717_v33 = vpop.eup %622 }
  0x32   : > { %v314_v36 = vcombine.high %v717_v33, %v717_v33  ;;  %v316_v37 = vsel %vm291_vm0, %v717_v33, 0.0 }
  0x33   : > { %v317_v38 = vrot.slane %v316_v37, 4 }
  0x34   : > { %v323_v42 = vsel %vm291_vm0, %v314_v36, 0.0  ;;  %v392_v36 = vsub.f32 1.0, %v285_v25 }
  0x35   : > { %v318_v46 = vadd.f32 %v317_v38, %v316_v37  ;;  %v324_v47 = vrot.slane %v323_v42, 4  ;;  %v351_v38 = vrot.slane %v350_v26, 1 }
  0x36   : > { %v395_v49 = vcombine.low %v391_v35, %v392_v36 }
  0x37   : > { %v319_v53 = vrot.slane %v318_v46, 2  ;;  %v325_v54 = vadd.f32 %v324_v47, %v323_v42  ;;  %v426_v42 = vadd.f32 %v425_v29, %v424_v21  ;;  %v352_v51 = vadd.f32 %v351_v38, %v350_v26 }
  0x39   : > { %v320_v58 = vadd.f32 %v319_v53, %v318_v46  ;;  %v326_v59 = vrot.slane %v325_v54, 2  ;;  %v431_v46 = vshrl.u32 %v430_v31, 7  ;;  %v427_v55 = vrot.slane %v426_v42, 1 }
  0x3b   : > { %v321_v0 = vrot.slane %v320_v58, 1  ;;  %v327_v1 = vadd.f32 %v326_v59, %v325_v54  ;;  %v420_v54 = vrot.slane %v419_v41, 1  ;;  %v436_v59 = vsub.s32 4, %v431_v46 }
  0x3c   : > { %v428_v63 = vadd.f32 %v427_v55, %v426_v42 }
  0x3d   : > { %v322_v5 = vadd.f32 %v321_v0, %v320_v58  ;;  %v328_v6 = vrot.slane %v327_v1, 1  ;;  %v432_v58 = vsub.s32 0, %v431_v46  ;;  %v421_v62 = vadd.f32 %v420_v54, %v419_v41 }
  0x3f   : > { %v329_v10 = vadd.f32 %v328_v6, %v327_v1  ;;  %624 = vlog2.f32 %v322_v5 }
  0x41   : > { %626 = vlog2.f32 %v329_v10  ;;  %v386_v17 = vcombine.low %v322_v5, %v329_v10 }
  0x43   : > { %628 = vrcp.f32 %v386_v17 }
  0x49   : > { %v625_v32 = vpop.eup %624 }
  0x4a   : > { %v331_v37 = vmul.f32 0.6931472, %v625_v32 }
  0x4b   : > { %v627_v40 = vpop.eup %626 }
  0x4c   : > { %v333_v43 = vmul.f32 0.6931472, %v627_v40  ;;  %v334_v44 = vadd.f32 %v331_v37, %v700_v13 }
  0x4d   : > { %v629_v47 = vpop.eup %628 }
  0x4e   : > { %v335_v50 = vadd.f32 %v333_v43, %v702_v15  ;;  %v380_v52 = vmul.f32 %v372_v39, %v334_v44  ;;  %v389_v53 = vmul.f32 %v629_v47, %v717_v33 }
  0x50   : > { %v381_v56 = vmul.f32 %v379_v45, %v335_v50  ;;  %v390_v57 = vsub.f32 1.0, %v389_v53  ;;  %v382_v60 = vsub.f32 %v380_v52, %v352_v51 }
  0x52   : > { %v383_v13 = vsub.f32 %v381_v56, %v359_v48  ;;  %v397_v61 = vmul.f32 %v395_v49, %v390_v57 }
  0x54   : > { %v433_v0 = vrot.slane %v397_v61, %v432_v58  ;;  %v437_v1 = vrot.slane %v397_v61, %v436_v59 }
  0x56   : > { %v441_v15 = vsel %vm440_vm3, %v382_v60, %v433_v0  ;;  %v442_v2 = vsel %vm440_vm3, %v383_v13, %v437_v1 }
  0x57   : > { %v444_v33 = vsel %vm443_vm4, %v441_v15, %v421_v62  ;;  %v445_v3 = vsel %vm443_vm4, %v442_v2, %v428_v63 }
  0x58   : > { %v448_v4 = vcombine.low %v444_v33, %v445_v3 }
  0x5a   : > { %450 = vst [vmem:[%s280_s29] sm:$0x77] %v448_v4 }
  0x5b PF: > { %s13_s14 = sadd.s32 1, %s652_s14   ;;  %s768_s12 = smov %s648_s13 }
  0x5c   : > { %p10_p5 = scmp.ge.s32.totalorder %s13_s14, 4   ;;  %s769_s13 = smov %s771_s15 }
  0x5e   :  { %12 = sbr.rel (!%p10_p5) target bundleno = 2 (0x2), region = 68 }

</bundles_post_ra>
